<compile_context>
chip_gen: v5e
topology: v5e:2x2
jax: 0.10.0
libtpu: 0.0.40
codegen_flags: <defaults>
</compile_context>

<pallas_src>
import jax
import jax.numpy as jnp
from jax.experimental import pallas as pl
from jax.experimental.pallas import tpu as pltpu


DEFAULT_COMPUTE_DTYPE = jnp.bfloat16


def _round_up(x, m):
    return (x + m - 1) // m * m


def _cdiv(a, b):
    return (a + b - 1) // b


def _vmem_capacity_bytes():
    try:
        return int(pltpu.get_tpu_info().vmem_capacity_bytes)
    except Exception:
        return 64 * 1024 * 1024  # conservative: v7x has 64 MiB per TensorCore


_VMEM_CAP = _vmem_capacity_bytes()
_VMEM_BUDGET = (_VMEM_CAP * 3) // 4   # planning budget for tiles + resident weights
_VMEM_LIMIT = (_VMEM_CAP * 7) // 8    # scoped limit handed to Mosaic


def _pipeline_mode_supported():
    try:
        pl.BlockSpec((8, 128), lambda i: (0, 0), pipeline_mode=pl.Buffered(1))
        return True
    except Exception:
        return False


_HAS_BUFFERED = _pipeline_mode_supported()


def _mlp_kernel(x_ref, w1_ref, b1_ref, w2_ref, b2_ref, o_ref):
    """One (TM, D) row tile: fused Linear -> ReLU -> Linear -> ReLU."""
    cdt = w1_ref.dtype
    # Cast activations to the MXU operand dtype in-kernel (cheaper than a
    # separate wrapper-side HBM cast pass).
    x = x_ref[...].astype(cdt)
    h = jnp.dot(x, w1_ref[...], preferred_element_type=jnp.float32)
    h = jnp.maximum(h + b1_ref[...], 0.0)          # f32 bias-add + ReLU (VPU)
    y = jnp.dot(h.astype(cdt), w2_ref[...], preferred_element_type=jnp.float32)
    y = jnp.maximum(y + b2_ref[...], 0.0)
    o_ref[...] = y.astype(o_ref.dtype)


def _pick_tm(rows, d, x_itemsize, out_itemsize, compute_itemsize, weight_buf_factor):
    """Largest 8-aligned row tile whose buffers + resident weights fit VMEM."""
    weight_bytes = weight_buf_factor * (2 * d * d * compute_itemsize + 2 * d * 4)
    remaining = _VMEM_BUDGET - weight_bytes
    # Per row: x (2 bufs, input dtype) + out (2 bufs, output dtype) + f32/bf16
    # intermediates (h, h_cast, y).
    per_row = 2 * d * x_itemsize + 2 * d * out_itemsize + 4 * d * 4
    if remaining < 8 * per_row:
        return None                            # resident-weight design doesn't fit
    tm = (remaining // per_row // 8) * 8
    tm = min(tm, 4096)                         # diminishing returns past a few K rows
    tm = min(tm, max(8, (rows // 8) * 8))      # don't tile past the problem itself
    if rows >= 16:                             # keep >=2 grid steps (v7x megacore)
        tm = min(tm, _round_up(_cdiv(rows, 2), 8))
    return max(int(tm), 8)


def _run_pallas(x2, w1, b1, w2, b2, *, tm, out_dtype, single_buffer_weights):
    rows, d = x2.shape
    grid = (_cdiv(rows, tm),)

    def resident(shape):
        # Constant index_map -> block stays in VMEM, never re-DMA'd.
        if single_buffer_weights:
            return pl.BlockSpec(shape, lambda i: (0, 0), pipeline_mode=pl.Buffered(1))
        return pl.BlockSpec(shape, lambda i: (0, 0))

    return pl.pallas_call(
        _mlp_kernel,
        out_shape=jax.ShapeDtypeStruct((rows, d), out_dtype),
        grid_spec=pltpu.PrefetchScalarGridSpec(
            num_scalar_prefetch=0,
            grid=grid,
            in_specs=[
                pl.BlockSpec((tm, d), lambda i: (i, 0)),   # x row tile (pipelined)
                resident((d, d)),                          # w1 (VMEM resident)
                resident((1, d)),                          # b1
                resident((d, d)),                          # w2
                resident((1, d)),                          # b2
            ],
            out_specs=pl.BlockSpec((tm, d), lambda i: (i, 0)),
        ),
        compiler_params=pltpu.CompilerParams(
            dimension_semantics=("parallel",),             # megacore row sharding
            vmem_limit_bytes=_VMEM_LIMIT,
        ),
    )(x2, w1, b1, w2, b2)


def group_nn_forward(x, w1, b1, w2, b2, *, compute_dtype=DEFAULT_COMPUTE_DTYPE,
                     out_dtype=None, tm=None):
    """relu(relu(x @ w1 + b1) @ w2 + b2) in a single fused Pallas kernel.

    x  : [..., D]   (any number of leading dims, like the PyTorch module)
    w1 : [D, D]     (already transposed vs. torch Linear.weight)
    b1 : [D]
    w2 : [D, D]
    b2 : [D]
    compute_dtype : MXU operand dtype (bf16 default; accumulation is always f32).
    out_dtype     : output dtype (defaults to x.dtype).

    For inference-style repeated calls, pre-cast w1/w2 to compute_dtype once;
    the astype below is then a no-op (no extra HBM traffic).
    """
    orig_shape = x.shape
    d = orig_shape[-1]
    out_dtype = jnp.dtype(x.dtype if out_dtype is None else out_dtype)
    compute_dtype = jnp.dtype(compute_dtype)

    rows = 1
    for s in orig_shape[:-1]:
        rows *= s
    if rows == 0:
        return jnp.zeros(orig_shape, out_dtype)

    x2 = x.reshape(rows, d)
    w1c = w1.astype(compute_dtype)
    w2c = w2.astype(compute_dtype)
    b1c = b1.reshape(1, d).astype(jnp.float32)
    b2c = b2.reshape(1, d).astype(jnp.float32)

    w_factor = 1 if _HAS_BUFFERED else 2
    if tm is None:
        tm = _pick_tm(rows, d, x2.dtype.itemsize, out_dtype.itemsize,
                      compute_dtype.itemsize, w_factor)
    else:
        tm = max(8, (int(tm) // 8) * 8)

    if tm is None:
        # Resident weights would not fit VMEM (very large D): keep it usable.
        # TODO(synk): add an N/K-tiled resident-weight Pallas kernel for huge D.
        h = jnp.maximum(
            jnp.dot(x2.astype(compute_dtype), w1c,
                    preferred_element_type=jnp.float32) + b1c, 0.0)
        y = jnp.maximum(
            jnp.dot(h.astype(compute_dtype), w2c,
                    preferred_element_type=jnp.float32) + b2c, 0.0)
        return y.astype(out_dtype).reshape(orig_shape)

    try:
        out = _run_pallas(x2, w1c, b1c, w2c, b2c, tm=int(tm), out_dtype=out_dtype,
                          single_buffer_weights=_HAS_BUFFERED)
    except Exception:
        if not _HAS_BUFFERED:
            raise
        # Safety net: retry with default double-buffered resident weights if the
        # lowering rejects Buffered(1).
        out = _run_pallas(x2, w1c, b1c, w2c, b2c, tm=int(tm), out_dtype=out_dtype,
                          single_buffer_weights=False)

    return out.reshape(orig_shape)


def init_params(base_dim, key):
    """Deterministic parameter init mimicking torch.nn.Linear's uniform init."""
    k1, k2, k3, k4 = jax.random.split(key, 4)
    bound = 1.0 / jnp.sqrt(base_dim)
    # Stored as [in_dim, out_dim] (i.e. torch weight.T) for row-major matmul.
    w1 = jax.random.uniform(k1, (base_dim, base_dim), jnp.float32, -bound, bound)
    b1 = jax.random.uniform(k2, (base_dim,), jnp.float32, -bound, bound)
    w2 = jax.random.uniform(k3, (base_dim, base_dim), jnp.float32, -bound, bound)
    b2 = jax.random.uniform(k4, (base_dim,), jnp.float32, -bound, bound)
    return w1, b1, w2, b2


def _reference(x, w1, b1, w2, b2):
    h = jnp.maximum(x @ w1 + b1, 0.0)
    return jnp.maximum(h @ w2 + b2, 0.0)


if __name__ == "__main__":
    base_num = 2   # number of "groups" in the leading batch dim
    base_dim = 32  # feature dim of the MLP
    batch = 8

    key = jax.random.PRNGKey(0)
    kx, kp = jax.random.split(key)

    # Small input consistent with the module: x1 of shape [base_num, batch, base_dim].
    x = jax.random.normal(kx, (base_num, batch, base_dim), jnp.float32)
    w1, b1, w2, b2 = init_params(base_dim, kp)

    ref = _reference(x, w1, b1, w2, b2)

    # Default path: bf16 MXU operands, f32 accumulation / epilogue.
    out = jax.block_until_ready(group_nn_forward(x, w1, b1, w2, b2))
    assert out.shape == x.shape and out.dtype == x.dtype
    assert jnp.allclose(out, ref, atol=1e-1, rtol=1e-1)

    # Exact f32 path.
    out_f32 = jax.block_until_ready(
        group_nn_forward(x, w1, b1, w2, b2, compute_dtype=jnp.float32))
    assert jnp.allclose(out_f32, ref, atol=1e-5, rtol=1e-5)

    # Ragged row count (exercises the clipped partial final row tile).
    x_odd = x.reshape(-1, base_dim)[:13]
    out_odd = jax.block_until_ready(
        group_nn_forward(x_odd, w1, b1, w2, b2, compute_dtype=jnp.float32))
    assert jnp.allclose(out_odd, _reference(x_odd, w1, b1, w2, b2),
                        atol=1e-5, rtol=1e-5)

    # Empty batch edge case.
    x_empty = jnp.zeros((0, base_dim), jnp.float32)
    out_empty = jax.block_until_ready(group_nn_forward(x_empty, w1, b1, w2, b2))
    assert out_empty.shape == (0, base_dim)

    print("KERNEL_OK")
</pallas_src>

<mosaic_0001>
module attributes {stable_mosaic.version = 11 : i64} {
  func.func @_mlp_kernel(%arg0: i32, %arg1: memref<8x32xf32, #tpu.memory_space<vmem>>, %arg2: memref<32x32xbf16, #tpu.memory_space<vmem>>, %arg3: memref<1x32xf32, #tpu.memory_space<vmem>>, %arg4: memref<32x32xbf16, #tpu.memory_space<vmem>>, %arg5: memref<1x32xf32, #tpu.memory_space<vmem>>, %arg6: memref<8x32xf32, #tpu.memory_space<vmem>>) attributes {dimension_semantics = [#tpu.dimension_semantics<parallel>], iteration_bounds = array<i64: 2>, scalar_prefetch = 0 : i64, scratch_operands = 0 : i64, tpu.core_type = #tpu.core_type<tc>, window_params = [{transform_indices = @transform_0, window_bounds = array<i64: 8, 32>}, {pipeline_mode = #tpu.pipeline_mode<synchronous>, transform_indices = @transform_1, window_bounds = array<i64: 32, 32>}, {pipeline_mode = #tpu.pipeline_mode<synchronous>, transform_indices = @transform_2, window_bounds = array<i64: 1, 32>}, {pipeline_mode = #tpu.pipeline_mode<synchronous>, transform_indices = @transform_3, window_bounds = array<i64: 32, 32>}, {pipeline_mode = #tpu.pipeline_mode<synchronous>, transform_indices = @transform_4, window_bounds = array<i64: 1, 32>}, {transform_indices = @transform_5, window_bounds = array<i64: 8, 32>}]} {
    %c0 = arith.constant 0 : index
    %c0_0 = arith.constant 0 : index
    %0 = vector.load %arg1[%c0, %c0_0] : memref<8x32xf32, #tpu.memory_space<vmem>>, vector<8x32xf32>
    %1 = arith.truncf %0 : vector<8x32xf32> to vector<8x32xbf16>
    %c0_1 = arith.constant 0 : index
    %c0_2 = arith.constant 0 : index
    %2 = vector.load %arg2[%c0_1, %c0_2] : memref<32x32xbf16, #tpu.memory_space<vmem>>, vector<32x32xbf16>
    %cst = arith.constant dense<0.000000e+00> : vector<8x32xf32>
    %3 = tpu.matmul %1, %2, %cst {dimension_numbers = #tpu.dot_dimension_numbers<[1], [0], [0], [1], [0, 0, 1, 1], [], []>} : vector<8x32xbf16>, vector<32x32xbf16>, vector<8x32xf32> -> vector<8x32xf32>
    %c0_3 = arith.constant 0 : index
    %c0_4 = arith.constant 0 : index
    %4 = vector.load %arg3[%c0_3, %c0_4] : memref<1x32xf32, #tpu.memory_space<vmem>>, vector<1x32xf32>
    %5 = vector.broadcast %4 : vector<1x32xf32> to vector<8x32xf32>
    %6 = arith.addf %3, %5 : vector<8x32xf32>
    %cst_5 = arith.constant 0.000000e+00 : f32
    %7 = vector.broadcast %cst_5 : f32 to vector<8x32xf32>
    %8 = arith.maximumf %6, %7 : vector<8x32xf32>
    %9 = arith.truncf %8 : vector<8x32xf32> to vector<8x32xbf16>
    %c0_6 = arith.constant 0 : index
    %c0_7 = arith.constant 0 : index
    %10 = vector.load %arg4[%c0_6, %c0_7] : memref<32x32xbf16, #tpu.memory_space<vmem>>, vector<32x32xbf16>
    %cst_8 = arith.constant dense<0.000000e+00> : vector<8x32xf32>
    %11 = tpu.matmul %9, %10, %cst_8 {dimension_numbers = #tpu.dot_dimension_numbers<[1], [0], [0], [1], [0, 0, 1, 1], [], []>} : vector<8x32xbf16>, vector<32x32xbf16>, vector<8x32xf32> -> vector<8x32xf32>
    %c0_9 = arith.constant 0 : index
    %c0_10 = arith.constant 0 : index
    %12 = vector.load %arg5[%c0_9, %c0_10] : memref<1x32xf32, #tpu.memory_space<vmem>>, vector<1x32xf32>
    %13 = vector.broadcast %12 : vector<1x32xf32> to vector<8x32xf32>
    %14 = arith.addf %11, %13 : vector<8x32xf32>
    %cst_11 = arith.constant 0.000000e+00 : f32
    %15 = vector.broadcast %cst_11 : f32 to vector<8x32xf32>
    %16 = arith.maximumf %14, %15 : vector<8x32xf32>
    %c0_12 = arith.constant 0 : index
    %c0_13 = arith.constant 0 : index
    %17 = vector.load %arg6[%c0_12, %c0_13] : memref<8x32xf32, #tpu.memory_space<vmem>>, vector<8x32xf32>
    tpu.vector_store %arg6[%c0_12, %c0_13], %16 {strides = array<i32>} : memref<8x32xf32, #tpu.memory_space<vmem>>, vector<8x32xf32>,
    return
  }
  func.func @transform_0(%arg0: i32) -> (i32, i32) {
    %c0_i32 = arith.constant 0 : i32
    %c0_i32_0 = arith.constant 0 : i32
    return %arg0, %c0_i32 : i32, i32
  }
  func.func @transform_1(%arg0: i32) -> (i32, i32) {
    %c0_i32 = arith.constant 0 : i32
    %c0_i32_0 = arith.constant 0 : i32
    %c0_i32_1 = arith.constant 0 : i32
    return %c0_i32, %c0_i32_0 : i32, i32
  }
  func.func @transform_2(%arg0: i32) -> (i32, i32) {
    %c0_i32 = arith.constant 0 : i32
    %c0_i32_0 = arith.constant 0 : i32
    %c0_i32_1 = arith.constant 0 : i32
    return %c0_i32, %c0_i32_0 : i32, i32
  }
  func.func @transform_3(%arg0: i32) -> (i32, i32) {
    %c0_i32 = arith.constant 0 : i32
    %c0_i32_0 = arith.constant 0 : i32
    %c0_i32_1 = arith.constant 0 : i32
    return %c0_i32, %c0_i32_0 : i32, i32
  }
  func.func @transform_4(%arg0: i32) -> (i32, i32) {
    %c0_i32 = arith.constant 0 : i32
    %c0_i32_0 = arith.constant 0 : i32
    %c0_i32_1 = arith.constant 0 : i32
    return %c0_i32, %c0_i32_0 : i32, i32
  }
  func.func @transform_5(%arg0: i32) -> (i32, i32) {
    %c0_i32 = arith.constant 0 : i32
    %c0_i32_0 = arith.constant 0 : i32
    return %arg0, %c0_i32 : i32, i32
  }
}

module attributes {stable_mosaic.version = 11 : i64} {
  func.func @_mlp_kernel(%arg0: i32, %arg1: memref<8x32xf32, #tpu.memory_space<vmem>>, %arg2: memref<32x32xbf16, #tpu.memory_space<vmem>>, %arg3: memref<1x32xf32, #tpu.memory_space<vmem>>, %arg4: memref<32x32xbf16, #tpu.memory_space<vmem>>, %arg5: memref<1x32xf32, #tpu.memory_space<vmem>>, %arg6: memref<8x32xf32, #tpu.memory_space<vmem>>) attributes {dimension_semantics = [#tpu.dimension_semantics<parallel>], iteration_bounds = array<i64: 2>, scalar_prefetch = 0 : i64, scratch_operands = 0 : i64, tpu.core_type = #tpu.core_type<tc>, window_params = [{transform_indices = @transform_0, window_bounds = array<i64: 8, 32>}, {pipeline_mode = #tpu.pipeline_mode<synchronous>, transform_indices = @transform_1, window_bounds = array<i64: 32, 32>}, {pipeline_mode = #tpu.pipeline_mode<synchronous>, transform_indices = @transform_2, window_bounds = array<i64: 1, 32>}, {pipeline_mode = #tpu.pipeline_mode<synchronous>, transform_indices = @transform_3, window_bounds = array<i64: 32, 32>}, {pipeline_mode = #tpu.pipeline_mode<synchronous>, transform_indices = @transform_4, window_bounds = array<i64: 1, 32>}, {transform_indices = @transform_5, window_bounds = array<i64: 8, 32>}]} {
    %c0 = arith.constant 0 : index
    %c0_0 = arith.constant 0 : index
    %0 = vector.load %arg1[%c0, %c0_0] : memref<8x32xf32, #tpu.memory_space<vmem>>, vector<8x32xf32>
    %1 = arith.truncf %0 : vector<8x32xf32> to vector<8x32xbf16>
    %c0_1 = arith.constant 0 : index
    %c0_2 = arith.constant 0 : index
    %2 = vector.load %arg2[%c0_1, %c0_2] : memref<32x32xbf16, #tpu.memory_space<vmem>>, vector<32x32xbf16>
    %cst = arith.constant dense<0.000000e+00> : vector<8x32xf32>
    %3 = tpu.matmul %1, %2, %cst {dimension_numbers = #tpu.dot_dimension_numbers<[1], [0], [0], [1], [0, 0, 1, 1], [], []>} : vector<8x32xbf16>, vector<32x32xbf16>, vector<8x32xf32> -> vector<8x32xf32>
    %c0_3 = arith.constant 0 : index
    %c0_4 = arith.constant 0 : index
    %4 = vector.load %arg3[%c0_3, %c0_4] : memref<1x32xf32, #tpu.memory_space<vmem>>, vector<1x32xf32>
    %5 = vector.broadcast %4 : vector<1x32xf32> to vector<8x32xf32>
    %6 = arith.addf %3, %5 : vector<8x32xf32>
    %cst_5 = arith.constant 0.000000e+00 : f32
    %7 = vector.broadcast %cst_5 : f32 to vector<8x32xf32>
    %8 = arith.maximumf %6, %7 : vector<8x32xf32>
    %9 = arith.truncf %8 : vector<8x32xf32> to vector<8x32xbf16>
    %c0_6 = arith.constant 0 : index
    %c0_7 = arith.constant 0 : index
    %10 = vector.load %arg4[%c0_6, %c0_7] : memref<32x32xbf16, #tpu.memory_space<vmem>>, vector<32x32xbf16>
    %cst_8 = arith.constant dense<0.000000e+00> : vector<8x32xf32>
    %11 = tpu.matmul %9, %10, %cst_8 {dimension_numbers = #tpu.dot_dimension_numbers<[1], [0], [0], [1], [0, 0, 1, 1], [], []>} : vector<8x32xbf16>, vector<32x32xbf16>, vector<8x32xf32> -> vector<8x32xf32>
    %c0_9 = arith.constant 0 : index
    %c0_10 = arith.constant 0 : index
    %12 = vector.load %arg5[%c0_9, %c0_10] : memref<1x32xf32, #tpu.memory_space<vmem>>, vector<1x32xf32>
    %13 = vector.broadcast %12 : vector<1x32xf32> to vector<8x32xf32>
    %14 = arith.addf %11, %13 : vector<8x32xf32>
    %cst_11 = arith.constant 0.000000e+00 : f32
    %15 = vector.broadcast %cst_11 : f32 to vector<8x32xf32>
    %16 = arith.maximumf %14, %15 : vector<8x32xf32>
    %c0_12 = arith.constant 0 : index
    %c0_13 = arith.constant 0 : index
    %17 = vector.load %arg6[%c0_12, %c0_13] : memref<8x32xf32, #tpu.memory_space<vmem>>, vector<8x32xf32>
    tpu.vector_store %arg6[%c0_12, %c0_13], %16 {strides = array<i32>} : memref<8x32xf32, #tpu.memory_space<vmem>>, vector<8x32xf32>,
    return
  }
  func.func @transform_0(%arg0: i32) -> (i32, i32) {
    %c0_i32 = arith.constant 0 : i32
    %c0_i32_0 = arith.constant 0 : i32
    return %arg0, %c0_i32 : i32, i32
  }
  func.func @transform_1(%arg0: i32) -> (i32, i32) {
    %c0_i32 = arith.constant 0 : i32
    %c0_i32_0 = arith.constant 0 : i32
    %c0_i32_1 = arith.constant 0 : i32
    return %c0_i32, %c0_i32_0 : i32, i32
  }
  func.func @transform_2(%arg0: i32) -> (i32, i32) {
    %c0_i32 = arith.constant 0 : i32
    %c0_i32_0 = arith.constant 0 : i32
    %c0_i32_1 = arith.constant 0 : i32
    return %c0_i32, %c0_i32_0 : i32, i32
  }
  func.func @transform_3(%arg0: i32) -> (i32, i32) {
    %c0_i32 = arith.constant 0 : i32
    %c0_i32_0 = arith.constant 0 : i32
    %c0_i32_1 = arith.constant 0 : i32
    return %c0_i32, %c0_i32_0 : i32, i32
  }
  func.func @transform_4(%arg0: i32) -> (i32, i32) {
    %c0_i32 = arith.constant 0 : i32
    %c0_i32_0 = arith.constant 0 : i32
    %c0_i32_1 = arith.constant 0 : i32
    return %c0_i32, %c0_i32_0 : i32, i32
  }
  func.func @transform_5(%arg0: i32) -> (i32, i32) {
    %c0_i32 = arith.constant 0 : i32
    %c0_i32_0 = arith.constant 0 : i32
    return %arg0, %c0_i32 : i32, i32
  }
}

</mosaic_0001>

<bundles_post_ra>
// kernel: tpu_custom_call.1
= control target key start
LH: loop header
LB: loop body
LE: loop exit
PB: predicated region body
PF: predicated region fallthrough
CT: control target
= control target key end

     0   :  { %10 = vsyncpa [#allocation3], 0  ;;  %s923_s0 = inlined_call_operand.hbm [shape: f32[16,32], index: 0, kind: input, shape index: {}]   ;;  %s924_s1 = inlined_call_operand.hbm [shape: bf16[32,32], index: 1, kind: input, shape index: {}]   ;;  %s925_s2 = inlined_call_operand.vmem [shape: f32[1,32], index: 2, kind: input, shape index: {}]   ;;  %s926_s3 = inlined_call_operand.hbm [shape: bf16[32,32], index: 3, kind: input, shape index: {}]   ;;  %s927_s4 = inlined_call_operand.vmem [shape: f32[1,32], index: 4, kind: input, shape index: {}]   ;;  %s928_s5 = inlined_call_operand.hbm [shape: f32[16,32], index: 5, kind: output, shape index: {}]  }
   0x1   :  { %12 = vsyncpa [#allocation3 + $0x1], 0 }
   0x2   :  { %13 = vsyncpa [#allocation6], 0 }
   0x3   :  { %14 = vsyncpa [#allocation4], 0 }
   0x4   :  { %16 = vsyncpa [#allocation4 + $0x1], 0  ;;  %s765_s18 = smov 0   ;;  %s767_s19 = smov 0  }
   0x5   :  { %s769_s20 = smov 0   ;;  %s771_s21 = smov 0  }
   0x6 LB: > { %s174_s24 = sshll.u32 %s924_s1, 4  ;;  %s789_s25 = sadd.s32 4294967295, %s729_s21   ;;  %s729_s21 = sphi %s771_s21, %s939_s21   ;;  %s725_s20 = sphi %s769_s20, %s938_s20   ;;  %s721_s19 = sphi %s767_s19, %s937_s19   ;;  %s717_s18 = sphi %s765_s18, %s936_s18   ;;  %s175_s24 = int_to_ptr.hbm [resolvable:$true] %s174_s24 }
   0x7   : > { %p461_p0 = scmp.ge.s32.totalorder %s729_s21, 1  ;;  %p43_p1 = scmp.eq.s32.totalorder %s789_s25, 0 }
   0x8   : > { %p163_p2 = scmp.lt.s32.totalorder %s729_s21, 3  ;;  %s731_s27 = smov [#allocation5]  }
   0x9   : > { %s176_s28 = sshll.u32 %s731_s27, 4  ;;  %s191_s6 = sshll.u32 %s926_s3, 4  ;;  %s177_s28 = int_to_ptr.vmem [resolvable:$true] %s176_s28  ;;  %s192_s6 = int_to_ptr.hbm [resolvable:$true] %s191_s6 }
   0xa   : > { %p794_p3 = pnand %p461_p0, %p163_p2  ;;  %s732_s7 = smov [#allocation7]  }
   0xb   : > { %s193_s8 = sshll.u32 %s732_s7, 4  ;;  %s733_s9 = smov 64   ;;  %s194_s8 = int_to_ptr.vmem [resolvable:$true] %s193_s8 }
   0xc   : > { %p510_p4 = pneg %p794_p3  ;;  %s734_s10 = smov 4  }
   0xd   : > { %s460_s11 = sadd.s32 4294967294, %s729_s21   ;;  %s808_s12 = sadd.s32 1, %s729_s21  }
   0xe   : > { %p511_p6 = pnand %p510_p4, %p43_p1  ;;  %s26_s13 = ssub.s32 %s729_s21, %s808_s12 }
   0xf   : > { %s29_s14 = sadd.s32 1, %s725_s20  ;;  %p27_p7 = scmp.eq.s32.totalorder %s26_s13, 0 }
  0x10   : > { %513 = dma.hbm_to_vmem [thread:$0]  (!%p511_p6), %s175_s24, 256, %s177_s28, [#allocation6], %s733_s9, %s733_s9, %s734_s10  }
  0x11   : > { %516 = dma.hbm_to_vmem [thread:$0]  (!%p511_p6), %s192_s6, 256, %s194_s8, [#allocation6], %s733_s9, %s733_s9, %s734_s10  }
  0x12   : > { %p36_p8 = scmp.ne.s32.totalorder %s725_s20, %s721_s19  ;;  %p37_p9 = scmp.eq.s32.totalorder %s729_s21, 0 }
  0x13   : > { %p42_p10 = scmp.ne.s32.totalorder %s721_s19, %s717_s18  ;;  %p150_p13 = scmp.eq.s32.totalorder %s789_s25, 1 }
  0x14   : > { %s819_s15 = scalar_select %p27_p7, %s725_s20, %s29_s14  }
  0x15   : > { %p821_p11 = por %p37_p9, %p36_p8  ;;  %p827_p12 = por %p43_p1, %p42_p10 }
  0x16   : > { %p156_p0 = scmp.eq.s32.totalorder %s460_s11, 1  ;;  %p527_p2 = scmp.lt.s32.totalorder %s729_s21, 2 }
  0x17   : > { %s210_s22 = sand.u32 1, %s725_s20   ;;  %p834_p4 = por %p150_p13, %p36_p8 }
  0x18   : > { %p838_p6 = por %p156_p0, %p42_p10  ;;  %s465_s27 = sshll.u32 %s210_s22, 3 }
  0x19   : > { %s466_s28 = sshll.u32 %s729_s21, 3  ;;  %s214_s7 = scalar_lea.vmem [#allocation2], %s465_s27 }
  0x1a   : > { %s218_s6 = scalar_lea.hbm %s923_s0, %s466_s28  ;;  %s222_s8 = sshll.u32 %s214_s7, 4  ;;  %s223_s8 = int_to_ptr.vmem [resolvable:$true] %s222_s8 }
  0x1b   : > { %s220_s9 = sshll.u32 %s218_s6, 4  ;;  %p848_p7 = pnand %p527_p2, %p821_p11  ;;  %s221_s9 = int_to_ptr.hbm [resolvable:$true] %s220_s9 }
  0x1c   : > { %s211_s11 = scalar_lea.sflag [#allocation3], %s210_s22  ;;  %s629_s13 = sshra.s32 %s221_s9, 4  ;;  %s630_s13 = int_to_ptr.hbm [resolvable:$true] %s629_s13 }
  0x1d   : > { %s631_s14 = scalar_lea.hbm %s630_s13, 8  ;;  %p633_p9 = pneg %p848_p7 }
  0x1e   : > { %p632_p8 = scmp.ne.s32.totalorder %s630_s13, %s631_s14  ;;  %s636_s29 = scalar_lea.hbm %s923_s0, 16 }
  0x1f   : > { %p637_p11 = scmp.lt.s32.totalorder %s630_s13, %s923_s0  ;;  %p638_p0 = scmp.lt.s32.totalorder %s636_s29, %s631_s14 }
  0x20   : > { %p634_p10 = pnand %p633_p9, %p632_p8 }
  0x21   : > { %p639_p2 = por %p638_p0, %p637_p11 }
  0x22   : > { %p635_p13 = pneg %p634_p10 }
  0x24   : > { %p640_p5 = pnand %p639_p2, %p635_p13 }
  0x26   : > { %643 = shalt.err (!%p640_p5)
}
  0x27   : > { %520 = dma.hbm_to_vmem [thread:$0]  (!%p848_p7), %s221_s9, 128, %s223_s8, %s211_s11  }
  0x28   : > { %231 = sbr.rel (%p794_p3) target bundleno = 322 (0x142), region = 40  ;;  %s865_s22 = sand.u32 (!%p794_p3), 1, %s721_s19  }
  0x29   : > { %s468_s6 = sshll.u32 (!%p794_p3), %s865_s22, 3  ;;  %s234_s7 = scalar_lea.sflag (!%p794_p3), [#allocation3], %s865_s22 }
  0x2a   : > { %s237_s13 = scalar_lea.vmem (!%p794_p3), [#allocation2], %s468_s6 }
  0x2d   : > { %704 = dma.done.wait (%p827_p12), %s234_s7, 128  }
  0x2e   : > { %706 = vsyncadd (%p827_p12), %s234_s7, 4294967168 }
  0x2f   : > { %708 = dma.done.wait (%p43_p1), [#allocation6], 512  }
  0x30   : > { %710 = vsyncadd (%p43_p1), [#allocation6], 4294966784  ;;  %v495_v0 = vld [vmem:[#allocation5 + $0x8] sm:$0xff]  ;;  %v494_v1 = vld [vmem:[#allocation5] sm:$0xff]  ;;  %vm298_vm0 = vcmask 261120   ;;  %s491_s8 = sshll.u32 %s789_s25, 3 }
  0x31   : > { %308 = vmatpush.bf16.msra.mxu0 %v495_v0  ;;  %v276_v2 = vld [vmem:[%s237_s13] sm:$0xff]  ;;  %s366_s27 = scalar_lea.hbm %s928_s5, %s491_s8  ;;  %s274_s28 = scalar_lea.vmem [#allocation8], %s468_s6 }
  0x32   : > { %v277_v3 = vpack.c.bf16 %v276_v2, %v276_v2  ;;  %v497_v4 = vld [vmem:[#allocation7 + $0x8] sm:$0xff]  ;;  %v496_v5 = vld [vmem:[#allocation7] sm:$0xff]  ;;  %s368_s29 = sshll.u32 %s274_s28, 4  ;;  %s370_s30 = sshll.u32 %s366_s27, 4  ;;  %s369_s29 = int_to_ptr.vmem [resolvable:$true] %s368_s29  ;;  %s371_s30 = int_to_ptr.hbm [resolvable:$true] %s370_s30 }
  0x33   : > { %346 = vmatpush.bf16.msra.mxu1 %v497_v4  ;;  %v567_v6 = vld [vmem:[%s925_s2] ss:$0 sm:$0xff]  ;;  %s356_s25 = scalar_lea.sflag [#allocation4], %s865_s22  ;;  %s673_s16 = sshra.s32 %s371_s30, 4  ;;  %s674_s16 = int_to_ptr.hbm [resolvable:$true] %s673_s16 }
  0x34   : > { %v568_v12 = vld [vmem:[%s927_s4] ss:$0 sm:$0xff]  ;;  %s675_s7 = scalar_lea.hbm %s674_s16, 8  ;;  %s679_s6 = scalar_lea.hbm %s928_s5, 16 }
  0x35   : > { %309 = vmatpush.bf16.msra.mxu0 %v494_v1  ;;  %p676_p1 = scmp.ne.s32.totalorder %s674_s16, %s675_s7  ;;  %p680_p12 = scmp.lt.s32.totalorder %s674_s16, %s928_s5 }
  0x36   : > { %p681_p7 = scmp.lt.s32.totalorder %s679_s6, %s675_s7 }
  0x37   : > { %347 = vmatpush.bf16.msra.mxu1 %v496_v5  ;;  %p677_p3 = pnand %p676_p1, %p834_p4 }
  0x38   : > { %480 = vmatmul.msk.bf16.vlgmr.msra.gmra.mxu0 %vm298_vm0, %v277_v3  ;;  %p682_p8 = por %p681_p7, %p680_p12 }
  0x39   : > { %p678_p5 = pneg %p677_p3 }
  0x3b   : > { %p683_p9 = pnand %p682_p8, %p678_p5 }
  0xb5   : > { %v311_v7 = vpop.f32.mrf.mxu0 }
  0xb6   : > { %v312_v8 = vadd.f32 %v567_v6, %v311_v7 }
  0xb8   : > { %v315_v9 = vmax.f32 %v312_v8, 0.0 }
  0xba   : > { %v316_v10 = vpack.c.bf16 %v315_v9, %v315_v9 }
  0xbc   : > { %489 = vmatmul.msk.bf16.vlgmr.msra.gmra.mxu1 %vm298_vm0, %v316_v10 }
  0xbd   : > { %v313_v11 = vpop.f32.mrf.mxu0 }
 0x139   : > { %v349_v13 = vpop.f32.mrf.mxu1 }
 0x13a   : > { %v350_v14 = vadd.f32 %v568_v12, %v349_v13 }
 0x13c   : > { %v353_v15 = vmax.f32 %v350_v14, 0.0 }
 0x13e   : > { %354 = vst.msk [vmem:[%s274_s28] sm:$0xff] %vm298_vm0, %v353_v15 }
 0x13f   : > { %686 = shalt.err (!%p683_p9)
}
 0x140   : > { %508 = dma.vmem_to_hbm [thread:$0]  (%p834_p4), %s369_s29, 128, %s371_s30, %s356_s25  }
 0x141   : > { %v351_v16 = vpop.f32.mrf.mxu1 }
 0x142 PF: > { %s382_s22 = sand.u32 1, %s717_s18   ;;  %p935_p10 = scmp.ge.s32.totalorder %s729_s21, 2 }
 0x143   : > { %s383_s9 = scalar_lea.sflag [#allocation4], %s382_s22 }
 0x144   : > { %p522_p13 = pnand %p935_p10, %p838_p6 }
 0x146   : > { %p523_p11 = pneg %p522_p13 }
 0x148   : > { %712 = dma.done.wait (%p523_p11), %s383_s9, 128  }
 0x149   : > { %714 = vsyncadd (%p523_p11), %s383_s9, 4294967168  ;;  %p19_p0 = scmp.ge.s32.totalorder %s808_s12, 4   ;;  %s936_s18 = smov %s721_s19 }
 0x14a   : > { %s937_s19 = smov %s725_s20  ;;  %s938_s20 = smov %s819_s15 }
 0x14b   : > { %s939_s21 = smov %s808_s12  ;;  %21 = sbr.rel (!%p19_p0) target bundleno = 6 (0x6), region = 93 }
 0x150   :  { %389 = vsyncpa [#allocation3], 1 }
 0x151   :  { %391 = vsyncpa [#allocation3 + $0x1], 1 }
 0x152   :  { %392 = vsyncpa [#allocation6], 1 }
 0x153   :  { %393 = vsyncpa [#allocation4], 1 }
 0x154   :  { %395 = vsyncpa [#allocation4 + $0x1], 1 }

// kernel: tpu_custom_call.1
= control target key start
LH: loop header
LB: loop body
LE: loop exit
PB: predicated region body
PF: predicated region fallthrough
CT: control target
= control target key end

     0   :  { %10 = vsyncpa [#allocation3], 0  ;;  %s923_s0 = inlined_call_operand.hbm [shape: f32[16,32], index: 0, kind: input, shape index: {}]   ;;  %s924_s1 = inlined_call_operand.hbm [shape: bf16[32,32], index: 1, kind: input, shape index: {}]   ;;  %s925_s2 = inlined_call_operand.vmem [shape: f32[1,32], index: 2, kind: input, shape index: {}]   ;;  %s926_s3 = inlined_call_operand.hbm [shape: bf16[32,32], index: 3, kind: input, shape index: {}]   ;;  %s927_s4 = inlined_call_operand.vmem [shape: f32[1,32], index: 4, kind: input, shape index: {}]   ;;  %s928_s5 = inlined_call_operand.hbm [shape: f32[16,32], index: 5, kind: output, shape index: {}]  }
   0x1   :  { %12 = vsyncpa [#allocation3 + $0x1], 0 }
   0x2   :  { %13 = vsyncpa [#allocation6], 0 }
   0x3   :  { %14 = vsyncpa [#allocation4], 0 }
   0x4   :  { %16 = vsyncpa [#allocation4 + $0x1], 0  ;;  %s765_s18 = smov 0   ;;  %s767_s19 = smov 0  }
   0x5   :  { %s769_s20 = smov 0   ;;  %s771_s21 = smov 0  }
   0x6 LB: > { %s174_s24 = sshll.u32 %s924_s1, 4  ;;  %s789_s25 = sadd.s32 4294967295, %s729_s21   ;;  %s729_s21 = sphi %s771_s21, %s939_s21   ;;  %s725_s20 = sphi %s769_s20, %s938_s20   ;;  %s721_s19 = sphi %s767_s19, %s937_s19   ;;  %s717_s18 = sphi %s765_s18, %s936_s18   ;;  %s175_s24 = int_to_ptr.hbm [resolvable:$true] %s174_s24 }
   0x7   : > { %p461_p0 = scmp.ge.s32.totalorder %s729_s21, 1  ;;  %p43_p1 = scmp.eq.s32.totalorder %s789_s25, 0 }
   0x8   : > { %p163_p2 = scmp.lt.s32.totalorder %s729_s21, 3  ;;  %s731_s27 = smov [#allocation5]  }
   0x9   : > { %s176_s28 = sshll.u32 %s731_s27, 4  ;;  %s191_s6 = sshll.u32 %s926_s3, 4  ;;  %s177_s28 = int_to_ptr.vmem [resolvable:$true] %s176_s28  ;;  %s192_s6 = int_to_ptr.hbm [resolvable:$true] %s191_s6 }
   0xa   : > { %p794_p3 = pnand %p461_p0, %p163_p2  ;;  %s732_s7 = smov [#allocation7]  }
   0xb   : > { %s193_s8 = sshll.u32 %s732_s7, 4  ;;  %s733_s9 = smov 64   ;;  %s194_s8 = int_to_ptr.vmem [resolvable:$true] %s193_s8 }
   0xc   : > { %p510_p4 = pneg %p794_p3  ;;  %s734_s10 = smov 4  }
   0xd   : > { %s460_s11 = sadd.s32 4294967294, %s729_s21   ;;  %s808_s12 = sadd.s32 1, %s729_s21  }
   0xe   : > { %p511_p6 = pnand %p510_p4, %p43_p1  ;;  %s26_s13 = ssub.s32 %s729_s21, %s808_s12 }
   0xf   : > { %s29_s14 = sadd.s32 1, %s725_s20  ;;  %p27_p7 = scmp.eq.s32.totalorder %s26_s13, 0 }
  0x10   : > { %513 = dma.hbm_to_vmem [thread:$0]  (!%p511_p6), %s175_s24, 256, %s177_s28, [#allocation6], %s733_s9, %s733_s9, %s734_s10  }
  0x11   : > { %516 = dma.hbm_to_vmem [thread:$0]  (!%p511_p6), %s192_s6, 256, %s194_s8, [#allocation6], %s733_s9, %s733_s9, %s734_s10  }
  0x12   : > { %p36_p8 = scmp.ne.s32.totalorder %s725_s20, %s721_s19  ;;  %p37_p9 = scmp.eq.s32.totalorder %s729_s21, 0 }
  0x13   : > { %p42_p10 = scmp.ne.s32.totalorder %s721_s19, %s717_s18  ;;  %p150_p13 = scmp.eq.s32.totalorder %s789_s25, 1 }
  0x14   : > { %s819_s15 = scalar_select %p27_p7, %s725_s20, %s29_s14  }
  0x15   : > { %p821_p11 = por %p37_p9, %p36_p8  ;;  %p827_p12 = por %p43_p1, %p42_p10 }
  0x16   : > { %p156_p0 = scmp.eq.s32.totalorder %s460_s11, 1  ;;  %p527_p2 = scmp.lt.s32.totalorder %s729_s21, 2 }
  0x17   : > { %s210_s22 = sand.u32 1, %s725_s20   ;;  %p834_p4 = por %p150_p13, %p36_p8 }
  0x18   : > { %p838_p6 = por %p156_p0, %p42_p10  ;;  %s465_s27 = sshll.u32 %s210_s22, 3 }
  0x19   : > { %s466_s28 = sshll.u32 %s729_s21, 3  ;;  %s214_s7 = scalar_lea.vmem [#allocation2], %s465_s27 }
  0x1a   : > { %s218_s6 = scalar_lea.hbm %s923_s0, %s466_s28  ;;  %s222_s8 = sshll.u32 %s214_s7, 4  ;;  %s223_s8 = int_to_ptr.vmem [resolvable:$true] %s222_s8 }
  0x1b   : > { %s220_s9 = sshll.u32 %s218_s6, 4  ;;  %p848_p7 = pnand %p527_p2, %p821_p11  ;;  %s221_s9 = int_to_ptr.hbm [resolvable:$true] %s220_s9 }
  0x1c   : > { %s211_s11 = scalar_lea.sflag [#allocation3], %s210_s22  ;;  %s629_s13 = sshra.s32 %s221_s9, 4  ;;  %s630_s13 = int_to_ptr.hbm [resolvable:$true] %s629_s13 }
  0x1d   : > { %s631_s14 = scalar_lea.hbm %s630_s13, 8  ;;  %p633_p9 = pneg %p848_p7 }
  0x1e   : > { %p632_p8 = scmp.ne.s32.totalorder %s630_s13, %s631_s14  ;;  %s636_s29 = scalar_lea.hbm %s923_s0, 16 }
  0x1f   : > { %p637_p11 = scmp.lt.s32.totalorder %s630_s13, %s923_s0  ;;  %p638_p0 = scmp.lt.s32.totalorder %s636_s29, %s631_s14 }
  0x20   : > { %p634_p10 = pnand %p633_p9, %p632_p8 }
  0x21   : > { %p639_p2 = por %p638_p0, %p637_p11 }
  0x22   : > { %p635_p13 = pneg %p634_p10 }
  0x24   : > { %p640_p5 = pnand %p639_p2, %p635_p13 }
  0x26   : > { %643 = shalt.err (!%p640_p5)
}
  0x27   : > { %520 = dma.hbm_to_vmem [thread:$0]  (!%p848_p7), %s221_s9, 128, %s223_s8, %s211_s11  }
  0x28   : > { %231 = sbr.rel (%p794_p3) target bundleno = 322 (0x142), region = 40  ;;  %s865_s22 = sand.u32 (!%p794_p3), 1, %s721_s19  }
  0x29   : > { %s468_s6 = sshll.u32 (!%p794_p3), %s865_s22, 3  ;;  %s234_s7 = scalar_lea.sflag (!%p794_p3), [#allocation3], %s865_s22 }
  0x2a   : > { %s237_s13 = scalar_lea.vmem (!%p794_p3), [#allocation2], %s468_s6 }
  0x2d   : > { %704 = dma.done.wait (%p827_p12), %s234_s7, 128  }
  0x2e   : > { %706 = vsyncadd (%p827_p12), %s234_s7, 4294967168 }
  0x2f   : > { %708 = dma.done.wait (%p43_p1), [#allocation6], 512  }
  0x30   : > { %710 = vsyncadd (%p43_p1), [#allocation6], 4294966784  ;;  %v495_v0 = vld [vmem:[#allocation5 + $0x8] sm:$0xff]  ;;  %v494_v1 = vld [vmem:[#allocation5] sm:$0xff]  ;;  %vm298_vm0 = vcmask 261120   ;;  %s491_s8 = sshll.u32 %s789_s25, 3 }
  0x31   : > { %308 = vmatpush.bf16.msra.mxu0 %v495_v0  ;;  %v276_v2 = vld [vmem:[%s237_s13] sm:$0xff]  ;;  %s366_s27 = scalar_lea.hbm %s928_s5, %s491_s8  ;;  %s274_s28 = scalar_lea.vmem [#allocation8], %s468_s6 }
  0x32   : > { %v277_v3 = vpack.c.bf16 %v276_v2, %v276_v2  ;;  %v497_v4 = vld [vmem:[#allocation7 + $0x8] sm:$0xff]  ;;  %v496_v5 = vld [vmem:[#allocation7] sm:$0xff]  ;;  %s368_s29 = sshll.u32 %s274_s28, 4  ;;  %s370_s30 = sshll.u32 %s366_s27, 4  ;;  %s369_s29 = int_to_ptr.vmem [resolvable:$true] %s368_s29  ;;  %s371_s30 = int_to_ptr.hbm [resolvable:$true] %s370_s30 }
  0x33   : > { %346 = vmatpush.bf16.msra.mxu1 %v497_v4  ;;  %v567_v6 = vld [vmem:[%s925_s2] ss:$0 sm:$0xff]  ;;  %s356_s25 = scalar_lea.sflag [#allocation4], %s865_s22  ;;  %s673_s16 = sshra.s32 %s371_s30, 4  ;;  %s674_s16 = int_to_ptr.hbm [resolvable:$true] %s673_s16 }
  0x34   : > { %v568_v12 = vld [vmem:[%s927_s4] ss:$0 sm:$0xff]  ;;  %s675_s7 = scalar_lea.hbm %s674_s16, 8  ;;  %s679_s6 = scalar_lea.hbm %s928_s5, 16 }
  0x35   : > { %309 = vmatpush.bf16.msra.mxu0 %v494_v1  ;;  %p676_p1 = scmp.ne.s32.totalorder %s674_s16, %s675_s7  ;;  %p680_p12 = scmp.lt.s32.totalorder %s674_s16, %s928_s5 }
  0x36   : > { %p681_p7 = scmp.lt.s32.totalorder %s679_s6, %s675_s7 }
  0x37   : > { %347 = vmatpush.bf16.msra.mxu1 %v496_v5  ;;  %p677_p3 = pnand %p676_p1, %p834_p4 }
  0x38   : > { %480 = vmatmul.msk.bf16.vlgmr.msra.gmra.mxu0 %vm298_vm0, %v277_v3  ;;  %p682_p8 = por %p681_p7, %p680_p12 }
  0x39   : > { %p678_p5 = pneg %p677_p3 }
  0x3b   : > { %p683_p9 = pnand %p682_p8, %p678_p5 }
  0xb5   : > { %v311_v7 = vpop.f32.mrf.mxu0 }
  0xb6   : > { %v312_v8 = vadd.f32 %v567_v6, %v311_v7 }
  0xb8   : > { %v315_v9 = vmax.f32 %v312_v8, 0.0 }
  0xba   : > { %v316_v10 = vpack.c.bf16 %v315_v9, %v315_v9 }
  0xbc   : > { %489 = vmatmul.msk.bf16.vlgmr.msra.gmra.mxu1 %vm298_vm0, %v316_v10 }
  0xbd   : > { %v313_v11 = vpop.f32.mrf.mxu0 }
 0x139   : > { %v349_v13 = vpop.f32.mrf.mxu1 }
 0x13a   : > { %v350_v14 = vadd.f32 %v568_v12, %v349_v13 }
 0x13c   : > { %v353_v15 = vmax.f32 %v350_v14, 0.0 }
 0x13e   : > { %354 = vst.msk [vmem:[%s274_s28] sm:$0xff] %vm298_vm0, %v353_v15 }
 0x13f   : > { %686 = shalt.err (!%p683_p9)
}
 0x140   : > { %508 = dma.vmem_to_hbm [thread:$0]  (%p834_p4), %s369_s29, 128, %s371_s30, %s356_s25  }
 0x141   : > { %v351_v16 = vpop.f32.mrf.mxu1 }
 0x142 PF: > { %s382_s22 = sand.u32 1, %s717_s18   ;;  %p935_p10 = scmp.ge.s32.totalorder %s729_s21, 2 }
 0x143   : > { %s383_s9 = scalar_lea.sflag [#allocation4], %s382_s22 }
 0x144   : > { %p522_p13 = pnand %p935_p10, %p838_p6 }
 0x146   : > { %p523_p11 = pneg %p522_p13 }
 0x148   : > { %712 = dma.done.wait (%p523_p11), %s383_s9, 128  }
 0x149   : > { %714 = vsyncadd (%p523_p11), %s383_s9, 4294967168  ;;  %p19_p0 = scmp.ge.s32.totalorder %s808_s12, 4   ;;  %s936_s18 = smov %s721_s19 }
 0x14a   : > { %s937_s19 = smov %s725_s20  ;;  %s938_s20 = smov %s819_s15 }
 0x14b   : > { %s939_s21 = smov %s808_s12  ;;  %21 = sbr.rel (!%p19_p0) target bundleno = 6 (0x6), region = 93 }
 0x150   :  { %389 = vsyncpa [#allocation3], 1 }
 0x151   :  { %391 = vsyncpa [#allocation3 + $0x1], 1 }
 0x152   :  { %392 = vsyncpa [#allocation6], 1 }
 0x153   :  { %393 = vsyncpa [#allocation4], 1 }
 0x154   :  { %395 = vsyncpa [#allocation4 + $0x1], 1 }

</bundles_post_ra>
